<compile_context>
chip_gen: v7x
topology: tpu7x:2x2x1
jax: 0.10.0
libtpu: 0.0.40
codegen_flags: <defaults>
</compile_context>

<pallas_src>
import jax
import jax.numpy as jnp
from jax.experimental import pallas as pl
from jax.experimental.pallas import tpu as pltpu


def _fused_encoder_kernel(x_ref, w_ref, o_ref):
    # x_ref: [B, icd_dim + note_dim + 1]   (last column is constant 1.0)
    # w_ref: [icd_dim + note_dim + 1, 2*d] (block-diagonal weights + bias row)
    # o_ref: [B, 2*d]                      (lane-dense; 2*d == 128 -> full vreg)
    o_ref[...] = jnp.dot(
        x_ref[...], w_ref[...], preferred_element_type=jnp.float32
    ).astype(o_ref.dtype)


def _fused_forward(icd_x, note_x, w_aug):
    """Fused forward: returns (icd_encoded, note_encoded) like BaseEncoder."""
    B = icd_x.shape[0]
    two_d = w_aug.shape[1]
    d = two_d // 2
    k_aug = w_aug.shape[0]

    # Pre-concatenate inputs + constant ones column (cheap XLA concat in the
    # jitted wrapper; kernel sees a single dense [B, K] operand).
    ones_col = jnp.ones((B, 1), dtype=icd_x.dtype)
    x_aug = jnp.concatenate([icd_x, note_x, ones_col], axis=-1)

    flops = 2 * B * k_aug * two_d
    bytes_accessed = 4 * (x_aug.size + w_aug.size + B * two_d)

    vmem_spec = pl.BlockSpec(memory_space=pltpu.MemorySpace.VMEM)

    out = pl.pallas_call(
        _fused_encoder_kernel,
        out_shape=jax.ShapeDtypeStruct((B, two_d), icd_x.dtype),
        in_specs=[vmem_spec, vmem_spec],
        out_specs=vmem_spec,
        cost_estimate=pl.CostEstimate(
            flops=flops, transcendentals=0, bytes_accessed=bytes_accessed),
    )(x_aug, w_aug)

    # Kernel output stays a lane-dense [B, 2*d] slab; slice only because the
    # module's forward contract is two separate [B, d] tensors.
    return out[:, :d], out[:, d:]


_fused_forward_jit = jax.jit(_fused_forward)


class BaseEncoderPallas:
    """Mirror of the PyTorch BaseEncoder: two independent Linear encoders,
    executed as one fused block-diagonal matmul Pallas kernel."""

    def __init__(self, icd_dim, note_dim, d, key):
        k1, k2, k3, k4 = jax.random.split(key, 4)
        # Deterministic synthetic params (same shapes/init style as nn.Linear).
        bound_icd = 1.0 / jnp.sqrt(icd_dim)
        bound_note = 1.0 / jnp.sqrt(note_dim)
        self.icd_w = jax.random.uniform(
            k1, (d, icd_dim), jnp.float32, -bound_icd, bound_icd)
        self.icd_b = jax.random.uniform(
            k2, (d,), jnp.float32, -bound_icd, bound_icd)
        self.note_w = jax.random.uniform(
            k3, (d, note_dim), jnp.float32, -bound_note, bound_note)
        self.note_b = jax.random.uniform(
            k4, (d,), jnp.float32, -bound_note, bound_note)

        # Hoisted, kernel-friendly parameter form (computed once at init):
        # block-diagonal augmented weight, shape (icd_dim + note_dim + 1, 2*d):
        #   rows [0, icd_dim)                  -> icd_w^T in cols [0, d), zeros elsewhere
        #   rows [icd_dim, icd_dim+note_dim)   -> note_w^T in cols [d, 2d), zeros elsewhere
        #   last row                           -> [icd_b | note_b]   (bias folded in)
        two_d = 2 * d
        k_aug = icd_dim + note_dim + 1
        w_aug = jnp.zeros((k_aug, two_d), jnp.float32)
        w_aug = w_aug.at[:icd_dim, :d].set(self.icd_w.T)
        w_aug = w_aug.at[icd_dim:icd_dim + note_dim, d:].set(self.note_w.T)
        w_aug = w_aug.at[-1, :].set(
            jnp.concatenate([self.icd_b, self.note_b], axis=0))
        self.w_aug = w_aug

    def __call__(self, icd_multi_hot, note_multi_hot):
        return _fused_forward_jit(icd_multi_hot, note_multi_hot, self.w_aug)


if __name__ == "__main__":
    key = jax.random.PRNGKey(0)
    k_params, k_icd, k_note = jax.random.split(key, 3)

    batch = 8
    icd_dim = 32
    note_dim = 48
    d = 64  # fused output is [8, 128] -> one full lane-dense vreg

    model = BaseEncoderPallas(icd_dim, note_dim, d, k_params)

    # Multi-hot style inputs (0/1 floats), deterministic.
    icd_multi_hot = (jax.random.uniform(k_icd, (batch, icd_dim)) > 0.5).astype(
        jnp.float32)
    note_multi_hot = (jax.random.uniform(k_note, (batch, note_dim)) > 0.5).astype(
        jnp.float32)

    icd_enc, note_enc = model(icd_multi_hot, note_multi_hot)
    jax.block_until_ready((icd_enc, note_enc))

    # Reference check against plain JAX (PyTorch nn.Linear convention).
    ref_icd = icd_multi_hot @ model.icd_w.T + model.icd_b
    ref_note = note_multi_hot @ model.note_w.T + model.note_b
    assert icd_enc.shape == (batch, d) and note_enc.shape == (batch, d)
    assert jnp.allclose(icd_enc, ref_icd, atol=1e-5, rtol=1e-5)
    assert jnp.allclose(note_enc, ref_note, atol=1e-5, rtol=1e-5)

    print("KERNEL_OK")
</pallas_src>

<mosaic_0001>
module attributes {stable_mosaic.version = 11 : i64} {
  func.func @_fused_encoder_kernel(%arg0: memref<8x81xf32, #tpu.memory_space<vmem>>, %arg1: memref<81x128xf32, #tpu.memory_space<vmem>>, %arg2: memref<8x128xf32, #tpu.memory_space<vmem>>) attributes {dimension_semantics = [], scalar_prefetch = 0 : i64, scratch_operands = 0 : i64, tpu.core_type = #tpu.core_type<tc>} {
    %c0 = arith.constant 0 : index
    %c0_0 = arith.constant 0 : index
    %0 = vector.load %arg0[%c0, %c0_0] : memref<8x81xf32, #tpu.memory_space<vmem>>, vector<8x81xf32>
    %c0_1 = arith.constant 0 : index
    %c0_2 = arith.constant 0 : index
    %1 = vector.load %arg1[%c0_1, %c0_2] : memref<81x128xf32, #tpu.memory_space<vmem>>, vector<81x128xf32>
    %cst = arith.constant dense<0.000000e+00> : vector<8x128xf32>
    %2 = tpu.matmul %0, %1, %cst {dimension_numbers = #tpu.dot_dimension_numbers<[1], [0], [0], [1], [0, 0, 1, 1], [], []>} : vector<8x81xf32>, vector<81x128xf32>, vector<8x128xf32> -> vector<8x128xf32>
    %c0_3 = arith.constant 0 : index
    %c0_4 = arith.constant 0 : index
    %3 = vector.load %arg2[%c0_3, %c0_4] : memref<8x128xf32, #tpu.memory_space<vmem>>, vector<8x128xf32>
    tpu.vector_store %arg2[%c0_3, %c0_4], %2 {strides = array<i32>} : memref<8x128xf32, #tpu.memory_space<vmem>>, vector<8x128xf32>,
    return
  }
}

</mosaic_0001>

<bundles_post_ra>
// kernel: _fused_forward.1
= control target key start
LH: loop header
LB: loop body
LE: loop exit
PB: predicated region body
PF: predicated region fallthrough
CT: control target
= control target key end

     0   :  { %7 = vsyncpa [#allocation3], 0  ;;  %s205_s9 = smov [#allocation2]   ;;  %s244_s0 = inlined_call_operand.vmem [shape: f32[8,81], index: 0, kind: input, shape index: {}]   ;;  %s245_s1 = inlined_call_operand.hbm [shape: f32[81,128], index: 1, kind: input, shape index: {}]   ;;  %s246_s2 = inlined_call_operand.vmem [shape: f32[8,128], index: 2, kind: output, shape index: {}]  }
   0x1   :  { %s15_s10 = sshll.u32 %s205_s9, 4  ;;  %s181_s13 = scalar_lea.hbm %s245_s1, 1408  ;;  %s16_s10 = int_to_ptr.vmem [resolvable:$true] %s15_s10 }
   0x2   :  { %p182_p0 = scmp.ne.s32.totalorder %s245_s1, %s181_s13  ;;  %p185_p1 = scmp.lt.u32.totalorder %s181_s13, %s245_s1 }
   0x4   :  { %p187_p2 = pnand %p185_p1, %p182_p0 }
   0x6   :  { %190 = shalt.err (!%p187_p2)
}
   0x7   :  { %s191_s18 = scalar_lea.vmem %s16_s10, 1408  ;;  %p196_p4 = scmp.lt.s32.totalorder %s16_s10, %s16_s10 }
   0x8   :  { %p192_p3 = scmp.ne.s32.totalorder %s16_s10, %s191_s18  ;;  %p197_p5 = scmp.lt.s32.totalorder %s191_s18, %s191_s18 }
   0xa   :  { %p198_p6 = por %p197_p5, %p196_p4 }
   0xc   :  { %p199_p7 = pnand %p198_p6, %p192_p3 }
   0xe   :  { %202 = shalt.err (!%p199_p7)
}
   0xf   :  { %s206_s19 = smov 128   ;;  %s207_s20 = smov 8  }
  0x10   :  { %21 = dma.hbm_to_vmem [thread:$0]  %s245_s1, 1408, %s16_s10, [#allocation3], %s206_s19, %s206_s19, %s207_s20  }
  0x11   :  { %203 = dma.done.wait [#allocation3], 1408  }
  0x12   :  { %204 = vsyncadd [#allocation3], 4294965888  ;;  %v208_v0 = vmov 0.0|0.0   ;;  %vm209_vm0 = vmmov 0   ;;  %v210_v1 = vmov 0.0   ;;  %v26_v2 = vld [vmem:[#allocation2] sm:$0xff] }
  0x13   :  { %160 = vmatprep.subr.bf16.mxu0 %v208_v0  ;;  %157 = vmatprep.mubr.msk.f32.mxu0 %vm209_vm0, %v210_v1  ;;  %v27_v3 = vld [vmem:[#allocation2 + $0x8] sm:$0xff]  ;;  %v28_v4 = vld [vmem:[#allocation2 + $0x10] sm:$0xff]  ;;  %v29_v6 = vld [vmem:[#allocation2 + $0x18] sm:$0xff]  ;;  %vm41_vm1 = vcmask 1040384   ;;  %vm37_vm2 = vcmask 662528  }
  0x14   :  { %v161_v5 = vpack.c.bf16 %v27_v3, %v26_v2  ;;  %v164_v7 = vpack.c.bf16 %v29_v6, %v28_v4  ;;  %v30_v8 = vld [vmem:[#allocation2 + $0x20] sm:$0xff]  ;;  %v31_v9 = vld [vmem:[#allocation2 + $0x28] sm:$0xff]  ;;  %v32_v11 = vld [vmem:[#allocation2 + $0x30] sm:$0xff] }
  0x15   :  { %v167_v10 = vpack.c.bf16 %v31_v9, %v30_v8  ;;  %v33_v12 = vld [vmem:[#allocation2 + $0x38] sm:$0xff]  ;;  %v34_v14 = vld [vmem:[#allocation2 + $0x40] sm:$0xff]  ;;  %v35_v15 = vld [vmem:[#allocation2 + $0x48] sm:$0xff] }
  0x16   :  { %162 = vmatpush3.bf16.msra.mxu0 %v161_v5  ;;  %v170_v13 = vpack.c.bf16 %v33_v12, %v32_v11  ;;  %v173_v16 = vpack.c.bf16 %v35_v15, %v34_v14  ;;  %v36_v17 = vld [vmem:[#allocation2 + $0x50] sm:$0x1]  ;;  %v25_v18 = vld [vmem:[%s244_s0] sm:$0xff] }
  0x17   :  { %163 = vmatprep.subr.bf16.mxu0 %v208_v0 }
  0x1a   :  { %165 = vmatpush3.bf16.msra.mxu0 %v164_v7 }
  0x1b   :  { %166 = vmatprep.subr.bf16.mxu0 %v208_v0 }
  0x1e   :  { %168 = vmatpush3.bf16.msra.mxu0 %v167_v10 }
  0x1f   :  { %169 = vmatprep.subr.bf16.mxu0 %v208_v0 }
  0x22   :  { %171 = vmatpush3.bf16.msra.mxu0 %v170_v13 }
  0x23   :  { %172 = vmatprep.subr.bf16.mxu0 %v208_v0 }
  0x26   :  { %174 = vmatpush3.bf16.msra.mxu0 %v173_v16 }
  0x27   :  { %155 = vmatprep.subr.mxu0 %v210_v1 }
  0x2a   :  { %156 = vmatpush3.msk.msra.mxu0 %vm41_vm1, %v36_v17 }
  0x2b   :  { %158 = vmatmul.mubr.msk.f32.vlgmr.msra.gmra.mrb[0].mxu0 %vm37_vm2, %v25_v18 }
  0xfe   :  { %v111_v19 = vpop.f32.mrb[0].mxu0 }
  0xff   :  { %115 = vst [vmem:[%s246_s2] sm:$0xff] %v111_v19  ;;  %v159_v20 = vpop.f32.mrb[1].mxu0 }
 0x100   :  { %120 = vsyncpa [#allocation3], 1 }

</bundles_post_ra>
